<compile_context>
chip_gen: v7x
topology: tpu7x:2x2x1
jax: 0.10.0
libtpu: 0.0.40
codegen_flags: <defaults>
</compile_context>

<pallas_src>
import jax
import jax.numpy as jnp
from jax.experimental import pallas as pl
from jax.experimental.pallas import tpu as pltpu

INPUT_SIZE = 10
HIDDEN = 64


def gru_kernel(x_ref,        # (T*B, I)  bf16   time-major rows: row t*B + b == x[b, t, :]
               w_in_ref,     # (I, 3H)   bf16   lane-packed [W_ir^T | W_iz^T | W_in^T]
               w_rec_ref,    # (H, 3H)   bf16   lane-packed [W_hr^T | W_hz^T | W_hn^T]
               const_ref,    # (4, 3H)   f32    row0=[b_ir+b_hr|b_iz+b_hz|b_in], row1[:H]=b_hn,
                             #                  row2[:H]=w_out row, row3[0]=b_out
               out_ref):     # (B, 1)    f32
    TB, _ = x_ref.shape
    H = w_rec_ref.shape[0]
    B = out_ref.shape[0]
    T = TB // B
    H2, H3 = 2 * H, 3 * H

    # ---- Unpack the constants slab once, outside the recurrence. ----
    consts = const_ref[...]                                    # (4, 3H) f32, single load
    gx_bias = consts[0:1, :]                                   # (1, 3H)
    b_hn = jnp.broadcast_to(consts[1:2, :H], (B, H))           # hoisted broadcast
    w_out_row = consts[2:3, :H]                                # (1, H)
    b_out = consts[3:4, 0:1]                                   # (1, 1)

    # ---- Phase 1 (parallel over time): one packed input projection, biases folded. ----
    gx = jnp.dot(x_ref[...], w_in_ref[...],
                 preferred_element_type=jnp.float32) + gx_bias  # (T*B, 3H) f32

    w_rec = w_rec_ref[...]                                      # (H, 3H) bf16

    # ---- Phase 2: serial recurrence, fully unrolled (T static). ----
    h = jnp.zeros((B, H), jnp.float32)
    for t in range(T):
        gx_t = gx[t * B:(t + 1) * B, :]                         # (B, 3H), off the serial path
        gh = jnp.dot(h.astype(jnp.bfloat16), w_rec,
                     preferred_element_type=jnp.float32)        # ONE MXU push per step
        # PyTorch GRU gate order r, z, n;  b_hn stays inside r * (...)
        rz = jax.nn.sigmoid(gx_t[:, :H2] + gh[:, :H2])          # one 128-lane sigmoid
        r = rz[:, :H]
        z = rz[:, H:H2]
        n = jnp.tanh(gx_t[:, H2:H3] + r * (gh[:, H2:H3] + b_hn))
        h = (1.0 - z) * n + z * h

    # ---- Fused Linear(64, 1) head: VPU mul + cross-lane reduce (no width-1 MXU op). ----
    y = jnp.sum(h * w_out_row, axis=-1, keepdims=True) + b_out
    out_ref[...] = y.astype(out_ref.dtype)


def prepare_params(params):
    """One-time packing of static inference weights (hoisted out of the per-call path)."""
    H = HIDDEN
    w_ih, w_hh = params["w_ih"], params["w_hh"]   # (3H, I), (3H, H); gate order r, z, n
    b_ih, b_hh = params["b_ih"], params["b_hh"]   # (3H,)

    # x @ W^T with gates lane-packed [r|z|n]: the transpose already gives that column order.
    w_in_pack = w_ih.T.astype(jnp.bfloat16)       # (I, 3H)
    w_rec_pack = w_hh.T.astype(jnp.bfloat16)      # (H, 3H)

    # Folded input-side biases: [b_ir+b_hr | b_iz+b_hz | b_in]; b_hn must stay inside r*(...).
    gx_bias = jnp.concatenate([b_ih[:2 * H] + b_hh[:2 * H], b_ih[2 * H:]])   # (3H,)
    b_hn = b_hh[2 * H:3 * H]                                                  # (H,)
    w_out_row = params["w_out"].reshape(H)                                    # (H,)
    b_out = params["b_out"].reshape(())                                       # scalar

    consts = jnp.zeros((4, 3 * H), jnp.float32)
    consts = consts.at[0, :].set(gx_bias)
    consts = consts.at[1, :H].set(b_hn)
    consts = consts.at[2, :H].set(w_out_row)
    consts = consts.at[3, 0].set(b_out)
    return {"w_in": w_in_pack, "w_rec": w_rec_pack, "consts": consts}


@jax.jit
def rnn_forward(x, packed):
    """x: (B, T, INPUT_SIZE) float32, batch_first (PyTorch convention)."""
    B, T, I = x.shape
    # Time-major rows: row t*B + b  ==  x[b, t, :];  bf16 MXU operands, f32 accumulation.
    x_flat = jnp.transpose(x, (1, 0, 2)).reshape(T * B, I).astype(jnp.bfloat16)

    vmem = pl.BlockSpec(memory_space=pltpu.MemorySpace.VMEM)
    return pl.pallas_call(
        gru_kernel,
        out_shape=jax.ShapeDtypeStruct((B, 1), jnp.float32),
        in_specs=[vmem] * 4,
        out_specs=vmem,
    )(x_flat, packed["w_in"], packed["w_rec"], packed["consts"])


def rnn_reference(x, params):
    """Pure-JAX f32 reference of the PyTorch module (for a sanity check)."""
    B, T, _ = x.shape
    H = HIDDEN
    w_ih, w_hh = params["w_ih"], params["w_hh"]
    b_ih, b_hh = params["b_ih"], params["b_hh"]
    h = jnp.zeros((B, H), jnp.float32)
    for t in range(T):
        gx = x[:, t, :] @ w_ih.T + b_ih
        gh = h @ w_hh.T + b_hh
        r = jax.nn.sigmoid(gx[:, 0 * H:1 * H] + gh[:, 0 * H:1 * H])
        z = jax.nn.sigmoid(gx[:, 1 * H:2 * H] + gh[:, 1 * H:2 * H])
        n = jnp.tanh(gx[:, 2 * H:3 * H] + r * gh[:, 2 * H:3 * H])
        h = (1.0 - z) * n + z * h
    return h @ params["w_out"].T + params["b_out"]


def init_params(key):
    """Deterministic synthetic parameters matching nn.GRU(10,64)+Linear(64,1)."""
    ks = jax.random.split(key, 6)
    scale = 1.0 / jnp.sqrt(HIDDEN)
    return {
        "w_ih": jax.random.uniform(ks[0], (3 * HIDDEN, INPUT_SIZE), jnp.float32, -scale, scale),
        "w_hh": jax.random.uniform(ks[1], (3 * HIDDEN, HIDDEN), jnp.float32, -scale, scale),
        "b_ih": jax.random.uniform(ks[2], (3 * HIDDEN,), jnp.float32, -scale, scale),
        "b_hh": jax.random.uniform(ks[3], (3 * HIDDEN,), jnp.float32, -scale, scale),
        "w_out": jax.random.uniform(ks[4], (1, HIDDEN), jnp.float32, -scale, scale),
        "b_out": jax.random.uniform(ks[5], (1,), jnp.float32, -scale, scale),
    }


if __name__ == "__main__":
    key = jax.random.PRNGKey(0)
    kp, kx = jax.random.split(key)
    params = init_params(kp)
    packed = prepare_params(params)           # one-time weight packing (not per call)

    B, T = 2, 8
    x = jax.random.normal(kx, (B, T, INPUT_SIZE), jnp.float32)

    out = rnn_forward(x, packed)
    jax.block_until_ready(out)
    assert out.shape == (B, 1), out.shape

    ref = rnn_reference(x, params)
    # bf16 MXU operands (input + recurrent) -> generous tolerance vs. the f32 reference.
    assert jnp.allclose(out, ref, atol=5e-2, rtol=5e-2), (out, ref)

    print("KERNEL_OK")
</pallas_src>

<mosaic_0001>
module attributes {stable_mosaic.version = 11 : i64} {
  func.func @gru_kernel(%arg0: memref<16x10xbf16, #tpu.memory_space<vmem>>, %arg1: memref<10x192xbf16, #tpu.memory_space<vmem>>, %arg2: memref<64x192xbf16, #tpu.memory_space<vmem>>, %arg3: memref<4x192xf32, #tpu.memory_space<vmem>>, %arg4: memref<2x1xf32, #tpu.memory_space<vmem>>) attributes {dimension_semantics = [], scalar_prefetch = 0 : i64, scratch_operands = 0 : i64, tpu.core_type = #tpu.core_type<tc>} {
    %c0 = arith.constant 0 : index
    %c0_0 = arith.constant 0 : index
    %0 = vector.load %arg3[%c0, %c0_0] : memref<4x192xf32, #tpu.memory_space<vmem>>, vector<4x192xf32>
    %1 = vector.extract_strided_slice %0 {offsets = [0, 0], sizes = [1, 192], strides = [1, 1]} : vector<4x192xf32> to vector<1x192xf32>
    %2 = vector.extract_strided_slice %0 {offsets = [1, 0], sizes = [1, 64], strides = [1, 1]} : vector<4x192xf32> to vector<1x64xf32>
    %3 = vector.shape_cast %2 : vector<1x64xf32> to vector<1x64xf32>
    %4 = vector.broadcast %3 : vector<1x64xf32> to vector<2x64xf32>
    %5 = vector.extract_strided_slice %0 {offsets = [2, 0], sizes = [1, 64], strides = [1, 1]} : vector<4x192xf32> to vector<1x64xf32>
    %6 = vector.extract_strided_slice %0 {offsets = [3, 0], sizes = [1, 1], strides = [1, 1]} : vector<4x192xf32> to vector<1x1xf32>
    %c0_1 = arith.constant 0 : index
    %c0_2 = arith.constant 0 : index
    %7 = vector.load %arg0[%c0_1, %c0_2] : memref<16x10xbf16, #tpu.memory_space<vmem>>, vector<16x10xbf16>
    %c0_3 = arith.constant 0 : index
    %c0_4 = arith.constant 0 : index
    %8 = vector.load %arg1[%c0_3, %c0_4] : memref<10x192xbf16, #tpu.memory_space<vmem>>, vector<10x192xbf16>
    %cst = arith.constant dense<0.000000e+00> : vector<16x192xf32>
    %9 = tpu.matmul %7, %8, %cst {dimension_numbers = #tpu.dot_dimension_numbers<[1], [0], [0], [1], [0, 0, 1, 1], [], []>} : vector<16x10xbf16>, vector<10x192xbf16>, vector<16x192xf32> -> vector<16x192xf32>
    %10 = vector.broadcast %1 : vector<1x192xf32> to vector<16x192xf32>
    %11 = arith.addf %9, %10 : vector<16x192xf32>
    %c0_5 = arith.constant 0 : index
    %c0_6 = arith.constant 0 : index
    %12 = vector.load %arg2[%c0_5, %c0_6] : memref<64x192xbf16, #tpu.memory_space<vmem>>, vector<64x192xbf16>
    %cst_7 = arith.constant 0.000000e+00 : f32
    %13 = vector.broadcast %cst_7 : f32 to vector<2x64xf32>
    %14 = vector.extract_strided_slice %11 {offsets = [0, 0], sizes = [2, 192], strides = [1, 1]} : vector<16x192xf32> to vector<2x192xf32>
    %15 = arith.truncf %13 : vector<2x64xf32> to vector<2x64xbf16>
    %cst_8 = arith.constant dense<0.000000e+00> : vector<2x192xf32>
    %16 = tpu.matmul %15, %12, %cst_8 {dimension_numbers = #tpu.dot_dimension_numbers<[1], [0], [0], [1], [0, 0, 1, 1], [], []>} : vector<2x64xbf16>, vector<64x192xbf16>, vector<2x192xf32> -> vector<2x192xf32>
    %17 = vector.extract_strided_slice %14 {offsets = [0, 0], sizes = [2, 128], strides = [1, 1]} : vector<2x192xf32> to vector<2x128xf32>
    %18 = vector.extract_strided_slice %16 {offsets = [0, 0], sizes = [2, 128], strides = [1, 1]} : vector<2x192xf32> to vector<2x128xf32>
    %19 = arith.addf %17, %18 : vector<2x128xf32>
    %20 = arith.negf %19 : vector<2x128xf32>
    %21 = math.exp %20 : vector<2x128xf32>
    %cst_9 = arith.constant 1.000000e+00 : f32
    %22 = vector.broadcast %cst_9 : f32 to vector<2x128xf32>
    %23 = arith.addf %22, %21 : vector<2x128xf32>
    %24 = arith.divf %22, %23 : vector<2x128xf32>
    %25 = vector.extract_strided_slice %24 {offsets = [0, 0], sizes = [2, 64], strides = [1, 1]} : vector<2x128xf32> to vector<2x64xf32>
    %26 = vector.extract_strided_slice %24 {offsets = [0, 64], sizes = [2, 64], strides = [1, 1]} : vector<2x128xf32> to vector<2x64xf32>
    %27 = vector.extract_strided_slice %14 {offsets = [0, 128], sizes = [2, 64], strides = [1, 1]} : vector<2x192xf32> to vector<2x64xf32>
    %28 = vector.extract_strided_slice %16 {offsets = [0, 128], sizes = [2, 64], strides = [1, 1]} : vector<2x192xf32> to vector<2x64xf32>
    %29 = arith.addf %28, %4 : vector<2x64xf32>
    %30 = arith.mulf %25, %29 : vector<2x64xf32>
    %31 = arith.addf %27, %30 : vector<2x64xf32>
    %32 = math.tanh %31 : vector<2x64xf32>
    %cst_10 = arith.constant 1.000000e+00 : f32
    %33 = vector.broadcast %cst_10 : f32 to vector<2x64xf32>
    %34 = arith.subf %33, %26 : vector<2x64xf32>
    %35 = arith.mulf %34, %32 : vector<2x64xf32>
    %36 = arith.mulf %26, %13 : vector<2x64xf32>
    %37 = arith.addf %35, %36 : vector<2x64xf32>
    %38 = vector.extract_strided_slice %11 {offsets = [2, 0], sizes = [2, 192], strides = [1, 1]} : vector<16x192xf32> to vector<2x192xf32>
    %39 = arith.truncf %37 : vector<2x64xf32> to vector<2x64xbf16>
    %cst_11 = arith.constant dense<0.000000e+00> : vector<2x192xf32>
    %40 = tpu.matmul %39, %12, %cst_11 {dimension_numbers = #tpu.dot_dimension_numbers<[1], [0], [0], [1], [0, 0, 1, 1], [], []>} : vector<2x64xbf16>, vector<64x192xbf16>, vector<2x192xf32> -> vector<2x192xf32>
    %41 = vector.extract_strided_slice %38 {offsets = [0, 0], sizes = [2, 128], strides = [1, 1]} : vector<2x192xf32> to vector<2x128xf32>
    %42 = vector.extract_strided_slice %40 {offsets = [0, 0], sizes = [2, 128], strides = [1, 1]} : vector<2x192xf32> to vector<2x128xf32>
    %43 = arith.addf %41, %42 : vector<2x128xf32>
    %44 = arith.negf %43 : vector<2x128xf32>
    %45 = math.exp %44 : vector<2x128xf32>
    %cst_12 = arith.constant 1.000000e+00 : f32
    %46 = vector.broadcast %cst_12 : f32 to vector<2x128xf32>
    %47 = arith.addf %46, %45 : vector<2x128xf32>
    %48 = arith.divf %46, %47 : vector<2x128xf32>
    %49 = vector.extract_strided_slice %48 {offsets = [0, 0], sizes = [2, 64], strides = [1, 1]} : vector<2x128xf32> to vector<2x64xf32>
    %50 = vector.extract_strided_slice %48 {offsets = [0, 64], sizes = [2, 64], strides = [1, 1]} : vector<2x128xf32> to vector<2x64xf32>
    %51 = vector.extract_strided_slice %38 {offsets = [0, 128], sizes = [2, 64], strides = [1, 1]} : vector<2x192xf32> to vector<2x64xf32>
    %52 = vector.extract_strided_slice %40 {offsets = [0, 128], sizes = [2, 64], strides = [1, 1]} : vector<2x192xf32> to vector<2x64xf32>
    %53 = arith.addf %52, %4 : vector<2x64xf32>
    %54 = arith.mulf %49, %53 : vector<2x64xf32>
    %55 = arith.addf %51, %54 : vector<2x64xf32>
    %56 = math.tanh %55 : vector<2x64xf32>
    %cst_13 = arith.constant 1.000000e+00 : f32
    %57 = vector.broadcast %cst_13 : f32 to vector<2x64xf32>
    %58 = arith.subf %57, %50 : vector<2x64xf32>
    %59 = arith.mulf %58, %56 : vector<2x64xf32>
    %60 = arith.mulf %50, %37 : vector<2x64xf32>
    %61 = arith.addf %59, %60 : vector<2x64xf32>
    %62 = vector.extract_strided_slice %11 {offsets = [4, 0], sizes = [2, 192], strides = [1, 1]} : vector<16x192xf32> to vector<2x192xf32>
    %63 = arith.truncf %61 : vector<2x64xf32> to vector<2x64xbf16>
    %cst_14 = arith.constant dense<0.000000e+00> : vector<2x192xf32>
    %64 = tpu.matmul %63, %12, %cst_14 {dimension_numbers = #tpu.dot_dimension_numbers<[1], [0], [0], [1], [0, 0, 1, 1], [], []>} : vector<2x64xbf16>, vector<64x192xbf16>, vector<2x192xf32> -> vector<2x192xf32>
    %65 = vector.extract_strided_slice %62 {offsets = [0, 0], sizes = [2, 128], strides = [1, 1]} : vector<2x192xf32> to vector<2x128xf32>
    %66 = vector.extract_strided_slice %64 {offsets = [0, 0], sizes = [2, 128], strides = [1, 1]} : vector<2x192xf32> to vector<2x128xf32>
    %67 = arith.addf %65, %66 : vector<2x128xf32>
    %68 = arith.negf %67 : vector<2x128xf32>
    %69 = math.exp %68 : vector<2x128xf32>
    %cst_15 = arith.constant 1.000000e+00 : f32
    %70 = vector.broadcast %cst_15 : f32 to vector<2x128xf32>
    %71 = arith.addf %70, %69 : vector<2x128xf32>
    %72 = arith.divf %70, %71 : vector<2x128xf32>
    %73 = vector.extract_strided_slice %72 {offsets = [0, 0], sizes = [2, 64], strides = [1, 1]} : vector<2x128xf32> to vector<2x64xf32>
    %74 = vector.extract_strided_slice %72 {offsets = [0, 64], sizes = [2, 64], strides = [1, 1]} : vector<2x128xf32> to vector<2x64xf32>
    %75 = vector.extract_strided_slice %62 {offsets = [0, 128], sizes = [2, 64], strides = [1, 1]} : vector<2x192xf32> to vector<2x64xf32>
    %76 = vector.extract_strided_slice %64 {offsets = [0, 128], sizes = [2, 64], strides = [1, 1]} : vector<2x192xf32> to vector<2x64xf32>
    %77 = arith.addf %76, %4 : vector<2x64xf32>
    %78 = arith.mulf %73, %77 : vector<2x64xf32>
    %79 = arith.addf %75, %78 : vector<2x64xf32>
    %80 = math.tanh %79 : vector<2x64xf32>
    %cst_16 = arith.constant 1.000000e+00 : f32
    %81 = vector.broadcast %cst_16 : f32 to vector<2x64xf32>
    %82 = arith.subf %81, %74 : vector<2x64xf32>
    %83 = arith.mulf %82, %80 : vector<2x64xf32>
    %84 = arith.mulf %74, %61 : vector<2x64xf32>
    %85 = arith.addf %83, %84 : vector<2x64xf32>
    %86 = vector.extract_strided_slice %11 {offsets = [6, 0], sizes = [2, 192], strides = [1, 1]} : vector<16x192xf32> to vector<2x192xf32>
    %87 = arith.truncf %85 : vector<2x64xf32> to vector<2x64xbf16>
    %cst_17 = arith.constant dense<0.000000e+00> : vector<2x192xf32>
    %88 = tpu.matmul %87, %12, %cst_17 {dimension_numbers = #tpu.dot_dimension_numbers<[1], [0], [0], [1], [0, 0, 1, 1], [], []>} : vector<2x64xbf16>, vector<64x192xbf16>, vector<2x192xf32> -> vector<2x192xf32>
    %89 = vector.extract_strided_slice %86 {offsets = [0, 0], sizes = [2, 128], strides = [1, 1]} : vector<2x192xf32> to vector<2x128xf32>
    %90 = vector.extract_strided_slice %88 {offsets = [0, 0], sizes = [2, 128], strides = [1, 1]} : vector<2x192xf32> to vector<2x128xf32>
    %91 = arith.addf %89, %90 : vector<2x128xf32>
    %92 = arith.negf %91 : vector<2x128xf32>
    %93 = math.exp %92 : vector<2x128xf32>
    %cst_18 = arith.constant 1.000000e+00 : f32
    %94 = vector.broadcast %cst_18 : f32 to vector<2x128xf32>
    %95 = arith.addf %94, %93 : vector<2x128xf32>
    %96 = arith.divf %94, %95 : vector<2x128xf32>
    %97 = vector.extract_strided_slice %96 {offsets = [0, 0], sizes = [2, 64], strides = [1, 1]} : vector<2x128xf32> to vector<2x64xf32>
    %98 = vector.extract_strided_slice %96 {offsets = [0, 64], sizes = [2, 64], strides = [1, 1]} : vector<2x128xf32> to vector<2x64xf32>
    %99 = vector.extract_strided_slice %86 {offsets = [0, 128], sizes = [2, 64], strides = [1, 1]} : vector<2x192xf32> to vector<2x64xf32>
    %100 = vector.extract_strided_slice %88 {offsets = [0, 128], sizes = [2, 64], strides = [1, 1]} : vector<2x192xf32> to vector<2x64xf32>
    %101 = arith.addf %100, %4 : vector<2x64xf32>
    %102 = arith.mulf %97, %101 : vector<2x64xf32>
    %103 = arith.addf %99, %102 : vector<2x64xf32>
    %104 = math.tanh %103 : vector<2x64xf32>
    %cst_19 = arith.constant 1.000000e+00 : f32
    %105 = vector.broadcast %cst_19 : f32 to vector<2x64xf32>
    %106 = arith.subf %105, %98 : vector<2x64xf32>
    %107 = arith.mulf %106, %104 : vector<2x64xf32>
    %108 = arith.mulf %98, %85 : vector<2x64xf32>
    %109 = arith.addf %107, %108 : vector<2x64xf32>
    %110 = vector.extract_strided_slice %11 {offsets = [8, 0], sizes = [2, 192], strides = [1, 1]} : vector<16x192xf32> to vector<2x192xf32>
    %111 = arith.truncf %109 : vector<2x64xf32> to vector<2x64xbf16>
    %cst_20 = arith.constant dense<0.000000e+00> : vector<2x192xf32>
    %112 = tpu.matmul %111, %12, %cst_20 {dimension_numbers = #tpu.dot_dimension_numbers<[1], [0], [0], [1], [0, 0, 1, 1], [], []>} : vector<2x64xbf16>, vector<64x192xbf16>, vector<2x192xf32> -> vector<2x192xf32>
    %113 = vector.extract_strided_slice %110 {offsets = [0, 0], sizes = [2, 128], strides = [1, 1]} : vector<2x192xf32> to vector<2x128xf32>
    %114 = vector.extract_strided_slice %112 {offsets = [0, 0], sizes = [2, 128], strides = [1, 1]} : vector<2x192xf32> to vector<2x128xf32>
    %115 = arith.addf %113, %114 : vector<2x128xf32>
    %116 = arith.negf %115 : vector<2x128xf32>
    %117 = math.exp %116 : vector<2x128xf32>
    %cst_21 = arith.constant 1.000000e+00 : f32
    %118 = vector.broadcast %cst_21 : f32 to vector<2x128xf32>
    %119 = arith.addf %118, %117 : vector<2x128xf32>
    %120 = arith.divf %118, %119 : vector<2x128xf32>
    %121 = vector.extract_strided_slice %120 {offsets = [0, 0], sizes = [2, 64], strides = [1, 1]} : vector<2x128xf32> to vector<2x64xf32>
    %122 = vector.extract_strided_slice %120 {offsets = [0, 64], sizes = [2, 64], strides = [1, 1]} : vector<2x128xf32> to vector<2x64xf32>
    %123 = vector.extract_strided_slice %110 {offsets = [0, 128], sizes = [2, 64], strides = [1, 1]} : vector<2x192xf32> to vector<2x64xf32>
    %124 = vector.extract_strided_slice %112 {offsets = [0, 128], sizes = [2, 64], strides = [1, 1]} : vector<2x192xf32> to vector<2x64xf32>
    %125 = arith.addf %124, %4 : vector<2x64xf32>
    %126 = arith.mulf %121, %125 : vector<2x64xf32>
    %127 = arith.addf %123, %126 : vector<2x64xf32>
    %128 = math.tanh %127 : vector<2x64xf32>
    %cst_22 = arith.constant 1.000000e+00 : f32
    %129 = vector.broadcast %cst_22 : f32 to vector<2x64xf32>
    %130 = arith.subf %129, %122 : vector<2x64xf32>
    %131 = arith.mulf %130, %128 : vector<2x64xf32>
    %132 = arith.mulf %122, %109 : vector<2x64xf32>
    %133 = arith.addf %131, %132 : vector<2x64xf32>
    %134 = vector.extract_strided_slice %11 {offsets = [10, 0], sizes = [2, 192], strides = [1, 1]} : vector<16x192xf32> to vector<2x192xf32>
    %135 = arith.truncf %133 : vector<2x64xf32> to vector<2x64xbf16>
    %cst_23 = arith.constant dense<0.000000e+00> : vector<2x192xf32>
    %136 = tpu.matmul %135, %12, %cst_23 {dimension_numbers = #tpu.dot_dimension_numbers<[1], [0], [0], [1], [0, 0, 1, 1], [], []>} : vector<2x64xbf16>, vector<64x192xbf16>, vector<2x192xf32> -> vector<2x192xf32>
    %137 = vector.extract_strided_slice %134 {offsets = [0, 0], sizes = [2, 128], strides = [1, 1]} : vector<2x192xf32> to vector<2x128xf32>
    %138 = vector.extract_strided_slice %136 {offsets = [0, 0], sizes = [2, 128], strides = [1, 1]} : vector<2x192xf32> to vector<2x128xf32>
    %139 = arith.addf %137, %138 : vector<2x128xf32>
    %140 = arith.negf %139 : vector<2x128xf32>
    %141 = math.exp %140 : vector<2x128xf32>
    %cst_24 = arith.constant 1.000000e+00 : f32
    %142 = vector.broadcast %cst_24 : f32 to vector<2x128xf32>
    %143 = arith.addf %142, %141 : vector<2x128xf32>
    %144 = arith.divf %142, %143 : vector<2x128xf32>
    %145 = vector.extract_strided_slice %144 {offsets = [0, 0], sizes = [2, 64], strides = [1, 1]} : vector<2x128xf32> to vector<2x64xf32>
    %146 = vector.extract_strided_slice %144 {offsets = [0, 64], sizes = [2, 64], strides = [1, 1]} : vector<2x128xf32> to vector<2x64xf32>
    %147 = vector.extract_strided_slice %134 {offsets = [0, 128], sizes = [2, 64], strides = [1, 1]} : vector<2x192xf32> to vector<2x64xf32>
    %148 = vector.extract_strided_slice %136 {offsets = [0, 128], sizes = [2, 64], strides = [1, 1]} : vector<2x192xf32> to vector<2x64xf32>
    %149 = arith.addf %148, %4 : vector<2x64xf32>
    %150 = arith.mulf %145, %149 : vector<2x64xf32>
    %151 = arith.addf %147, %150 : vector<2x64xf32>
    %152 = math.tanh %151 : vector<2x64xf32>
    %cst_25 = arith.constant 1.000000e+00 : f32
    %153 = vector.broadcast %cst_25 : f32 to vector<2x64xf32>
    %154 = arith.subf %153, %146 : vector<2x64xf32>
    %155 = arith.mulf %154, %152 : vector<2x64xf32>
    %156 = arith.mulf %146, %133 : vector<2x64xf32>
    %157 = arith.addf %155, %156 : vector<2x64xf32>
    %158 = vector.extract_strided_slice %11 {offsets = [12, 0], sizes = [2, 192], strides = [1, 1]} : vector<16x192xf32> to vector<2x192xf32>
    %159 = arith.truncf %157 : vector<2x64xf32> to vector<2x64xbf16>
    %cst_26 = arith.constant dense<0.000000e+00> : vector<2x192xf32>
    %160 = tpu.matmul %159, %12, %cst_26 {dimension_numbers = #tpu.dot_dimension_numbers<[1], [0], [0], [1], [0, 0, 1, 1], [], []>} : vector<2x64xbf16>, vector<64x192xbf16>, vector<2x192xf32> -> vector<2x192xf32>
    %161 = vector.extract_strided_slice %158 {offsets = [0, 0], sizes = [2, 128], strides = [1, 1]} : vector<2x192xf32> to vector<2x128xf32>
    %162 = vector.extract_strided_slice %160 {offsets = [0, 0], sizes = [2, 128], strides = [1, 1]} : vector<2x192xf32> to vector<2x128xf32>
    %163 = arith.addf %161, %162 : vector<2x128xf32>
    %164 = arith.negf %163 : vector<2x128xf32>
    %165 = math.exp %164 : vector<2x128xf32>
    %cst_27 = arith.constant 1.000000e+00 : f32
    %166 = vector.broadcast %cst_27 : f32 to vector<2x128xf32>
    %167 = arith.addf %166, %165 : vector<2x128xf32>
    %168 = arith.divf %166, %167 : vector<2x128xf32>
    %169 = vector.extract_strided_slice %168 {offsets = [0, 0], sizes = [2, 64], strides = [1, 1]} : vector<2x128xf32> to vector<2x64xf32>
    %170 = vector.extract_strided_slice %168 {offsets = [0, 64], sizes = [2, 64], strides = [1, 1]} : vector<2x128xf32> to vector<2x64xf32>
    %171 = vector.extract_strided_slice %158 {offsets = [0, 128], sizes = [2, 64], strides = [1, 1]} : vector<2x192xf32> to vector<2x64xf32>
    %172 = vector.extract_strided_slice %160 {offsets = [0, 128], sizes = [2, 64], strides = [1, 1]} : vector<2x192xf32> to vector<2x64xf32>
    %173 = arith.addf %172, %4 : vector<2x64xf32>
    %174 = arith.mulf %169, %173 : vector<2x64xf32>
    %175 = arith.addf %171, %174 : vector<2x64xf32>
    %176 = math.tanh %175 : vector<2x64xf32>
    %cst_28 = arith.constant 1.000000e+00 : f32
    %177 = vector.broadcast %cst_28 : f32 to vector<2x64xf32>
    %178 = arith.subf %177, %170 : vector<2x64xf32>
    %179 = arith.mulf %178, %176 : vector<2x64xf32>
    %180 = arith.mulf %170, %157 : vector<2x64xf32>
    %181 = arith.addf %179, %180 : vector<2x64xf32>
    %182 = vector.extract_strided_slice %11 {offsets = [14, 0], sizes = [2, 192], strides = [1, 1]} : vector<16x192xf32> to vector<2x192xf32>
    %183 = arith.truncf %181 : vector<2x64xf32> to vector<2x64xbf16>
    %cst_29 = arith.constant dense<0.000000e+00> : vector<2x192xf32>
    %184 = tpu.matmul %183, %12, %cst_29 {dimension_numbers = #tpu.dot_dimension_numbers<[1], [0], [0], [1], [0, 0, 1, 1], [], []>} : vector<2x64xbf16>, vector<64x192xbf16>, vector<2x192xf32> -> vector<2x192xf32>
    %185 = vector.extract_strided_slice %182 {offsets = [0, 0], sizes = [2, 128], strides = [1, 1]} : vector<2x192xf32> to vector<2x128xf32>
    %186 = vector.extract_strided_slice %184 {offsets = [0, 0], sizes = [2, 128], strides = [1, 1]} : vector<2x192xf32> to vector<2x128xf32>
    %187 = arith.addf %185, %186 : vector<2x128xf32>
    %188 = arith.negf %187 : vector<2x128xf32>
    %189 = math.exp %188 : vector<2x128xf32>
    %cst_30 = arith.constant 1.000000e+00 : f32
    %190 = vector.broadcast %cst_30 : f32 to vector<2x128xf32>
    %191 = arith.addf %190, %189 : vector<2x128xf32>
    %192 = arith.divf %190, %191 : vector<2x128xf32>
    %193 = vector.extract_strided_slice %192 {offsets = [0, 0], sizes = [2, 64], strides = [1, 1]} : vector<2x128xf32> to vector<2x64xf32>
    %194 = vector.extract_strided_slice %192 {offsets = [0, 64], sizes = [2, 64], strides = [1, 1]} : vector<2x128xf32> to vector<2x64xf32>
    %195 = vector.extract_strided_slice %182 {offsets = [0, 128], sizes = [2, 64], strides = [1, 1]} : vector<2x192xf32> to vector<2x64xf32>
    %196 = vector.extract_strided_slice %184 {offsets = [0, 128], sizes = [2, 64], strides = [1, 1]} : vector<2x192xf32> to vector<2x64xf32>
    %197 = arith.addf %196, %4 : vector<2x64xf32>
    %198 = arith.mulf %193, %197 : vector<2x64xf32>
    %199 = arith.addf %195, %198 : vector<2x64xf32>
    %200 = math.tanh %199 : vector<2x64xf32>
    %cst_31 = arith.constant 1.000000e+00 : f32
    %201 = vector.broadcast %cst_31 : f32 to vector<2x64xf32>
    %202 = arith.subf %201, %194 : vector<2x64xf32>
    %203 = arith.mulf %202, %200 : vector<2x64xf32>
    %204 = arith.mulf %194, %181 : vector<2x64xf32>
    %205 = arith.addf %203, %204 : vector<2x64xf32>
    %206 = vector.broadcast %5 : vector<1x64xf32> to vector<2x64xf32>
    %207 = arith.mulf %205, %206 : vector<2x64xf32>
    %cst_32 = arith.constant dense<0.000000e+00> : vector<2xf32>
    %208 = vector.multi_reduction <add>, %207, %cst_32 [1] : vector<2x64xf32> to vector<2xf32>
    %209 = vector.shape_cast %208 : vector<2xf32> to vector<2x1xf32>
    %210 = vector.broadcast %6 : vector<1x1xf32> to vector<2x1xf32>
    %211 = arith.addf %209, %210 : vector<2x1xf32>
    %c0_33 = arith.constant 0 : index
    %c0_34 = arith.constant 0 : index
    %212 = vector.load %arg4[%c0_33, %c0_34] : memref<2x1xf32, #tpu.memory_space<vmem>>, vector<2x1xf32>
    tpu.vector_store %arg4[%c0_33, %c0_34], %211 {strides = array<i32>} : memref<2x1xf32, #tpu.memory_space<vmem>>, vector<2x1xf32>,
    return
  }
}

</mosaic_0001>

<bundles_post_ra>
// kernel: rnn_forward.1
= control target key start
LH: loop header
LB: loop body
LE: loop exit
PB: predicated region body
PF: predicated region fallthrough
CT: control target
= control target key end

     0   :  { %9 = vsyncpa [#allocation3], 0  ;;  %s920_s15 = smov [#allocation2]   ;;  %s1139_s0 = inlined_call_operand.vmem [shape: bf16[16,10], index: 0, kind: input, shape index: {}]   ;;  %s1140_s1 = inlined_call_operand.vmem [shape: bf16[10,192], index: 1, kind: input, shape index: {}]   ;;  %s1141_s2 = inlined_call_operand.hbm [shape: bf16[64,192], index: 2, kind: input, shape index: {}]   ;;  %s1142_s3 = inlined_call_operand.vmem [shape: f32[4,192], index: 3, kind: input, shape index: {}]   ;;  %s1143_s4 = inlined_call_operand.vmem [shape: f32[2,1], index: 4, kind: output, shape index: {}]  }
   0x1   :  { %s19_s16 = sshll.u32 %s920_s15, 4  ;;  %s896_s19 = scalar_lea.hbm %s1141_s2, 1024  ;;  %s20_s16 = int_to_ptr.vmem [resolvable:$true] %s19_s16 }
   0x2   :  { %p897_p0 = scmp.ne.s32.totalorder %s1141_s2, %s896_s19  ;;  %p900_p1 = scmp.lt.u32.totalorder %s896_s19, %s1141_s2 }
   0x4   :  { %p902_p2 = pnand %p900_p1, %p897_p0 }
   0x6   :  { %905 = shalt.err (!%p902_p2)
}
   0x7   :  { %s906_s24 = scalar_lea.vmem %s20_s16, 1024  ;;  %p911_p4 = scmp.lt.s32.totalorder %s20_s16, %s20_s16 }
   0x8   :  { %p907_p3 = scmp.ne.s32.totalorder %s20_s16, %s906_s24  ;;  %p912_p5 = scmp.lt.s32.totalorder %s906_s24, %s906_s24 }
   0xa   :  { %p913_p6 = por %p912_p5, %p911_p4 }
   0xc   :  { %p914_p7 = pnand %p913_p6, %p907_p3 }
   0xe   :  { %917 = shalt.err (!%p914_p7)
}
   0xf   :  { %s921_s25 = smov 128   ;;  %s922_s26 = smov 8  }
  0x10   :  { %25 = dma.hbm_to_vmem [thread:$0]  %s1141_s2, 1024, %s20_s16, [#allocation3], %s921_s25, %s921_s25, %s922_s26  }
  0x11   :  { %918 = dma.done.wait [#allocation3], 1024  }
  0x12   :  { %919 = vsyncadd [#allocation3], 4294966272  ;;  %v923_v0 = vmov 0   ;;  %v964_v1 = vld [vmem:[#allocation2 + $0x4] ss:$8 sps:$4 sm:$0xff]   ;;  %vm77_vm0 = vcmask 1044480   ;;  %v33_v13 = vlaneseq }
  0x13   :  { %116 = vmatprep.mubr.bf16.mxu0 %v923_v0  ;;  %211 = vmatprep.mubr.bf16.mxu1 %v923_v0  ;;  %v966_v2 = vld [vmem:[#allocation2] ss:$8 sps:$4 sm:$0xff]   ;;  %v969_v3 = vld [vmem:[#allocation2 + $0x14] ss:$8 sps:$4 sm:$0xff]   ;;  %v971_v4 = vld [vmem:[#allocation2 + $0x10] ss:$8 sps:$4 sm:$0xff]  }
  0x14   :  { %179 = vmatprep.subr.bf16.mxu1 %v964_v1  ;;  %v838_v5 = vld [vmem:[%s1140_s1 + $0x4] ss:$8 sps:$4 sm:$0x1f]   ;;  %v840_v6 = vld [vmem:[%s1140_s1] ss:$8 sps:$4 sm:$0x1f]  }
  0x15   :  { %180 = vmatpush1.bf16.msra.mxu1 %v966_v2  ;;  %v981_v7 = vld [vmem:[#allocation2 + $0x24] ss:$8 sps:$4 sm:$0xff]   ;;  %802 = vmatprep.subr.msk.bf16.mxu0 %vm77_vm0, %v838_v5  ;;  %v79_v8 = vsel %vm77_vm0, %v840_v6, 0  ;;  %v987_v10 = vld [vmem:[#allocation2 + $0x20] ss:$8 sps:$4 sm:$0xff]   ;;  %vm73_vm1 = vcmask 80896  }
  0x16   :  { %181 = vmatprep.subr.bf16.mxu1 %v969_v3  ;;  %v844_v9 = vld [vmem:[%s1139_s0] sm:$0xff]   ;;  %85 = vmatpush1.bf16.msra.mxu0 %v79_v8  ;;  %v990_v11 = vld [vmem:[#allocation2 + $0x34] ss:$8 sps:$4 sm:$0xff]   ;;  %v994_v12 = vld [vmem:[#allocation2 + $0x30] ss:$8 sps:$4 sm:$0xff]   ;;  %v1018_v14 = vshrl.u32 %v33_v13, 7 }
  0x17   :  { %246 = vmatprep.subr.bf16.mxu0 %v964_v1  ;;  %v1024_v16 = vld [vmem:[%s1142_s3] sm:$0xff]  ;;  %s924_s3 = smov 64   ;;  %vm175_vm2 = vcmask 523264   ;;  %vm783_vm3 = vcmask 523270   ;;  %vm792_vm4 = vcmask 7174  }
  0x18   :  { %v44_v15 = vsub.s32 0, %v1018_v14  ;;  %v48_v17 = vsub.s32 4, %v1018_v14  ;;  %v35_v37 = vsub.s32 1, %v1018_v14 }
  0x19   :  { %182 = vmatpush1.bf16.msra.mxu1 %v971_v4  ;;  %803 = vmatmul.mubr.msk.bf16.vlgmr.msra.gmra.mrb[0].mxu0 %vm73_vm1, %v844_v9 }
  0x1a   :  { %183 = vmatprep.subr.bf16.mxu1 %v981_v7  ;;  %247 = vmatpush1.bf16.msra.mxu0 %v966_v2  ;;  %v45_v18 = vrot.slane %v1024_v16, %v44_v15  ;;  %v49_v19 = vrot.slane %v1024_v16, %v48_v17  ;;  %v1038_v38 = vrot.slane %v1024_v16, %v35_v37 }
  0x1b   :  { %248 = vmatprep.subr.bf16.mxu0 %v969_v3  ;;  %278 = vmatprep.mubr.bf16.mxu0 %v923_v0 }
  0x1c   :  { %v55_v20 = vrot.slane %v45_v18, %v44_v15  ;;  %v59_v22 = vrot.slane %v49_v19, %v44_v15 }
  0x1d   :  { %184 = vmatpush1.bf16.msra.mxu1 %v987_v10 }
  0x1e   :  { %185 = vmatprep.subr.bf16.mxu1 %v990_v11  ;;  %249 = vmatpush1.bf16.msra.mxu0 %v971_v4 }
  0x1f   :  { %250 = vmatprep.subr.bf16.mxu0 %v981_v7 }
  0x21   :  { %186 = vmatpush1.bf16.msra.mxu1 %v994_v12 }
  0x22   :  { %323 = vmatprep.subr.bf16.mxu1 %v964_v1  ;;  %251 = vmatpush1.bf16.msra.mxu0 %v987_v10 }
  0x23   :  { %252 = vmatprep.subr.bf16.mxu0 %v990_v11 }
  0x24   :  { %212 = vmatmul.mubr.bf16.vlgmr.msra.gmra.mrb[0].mxu1 %v923_v0 }
  0x25   :  { %324 = vmatpush1.bf16.msra.mxu1 %v966_v2  ;;  %355 = vmatprep.mubr.bf16.mxu1 %v923_v0 }
  0x26   :  { %325 = vmatprep.subr.bf16.mxu1 %v969_v3  ;;  %253 = vmatpush1.bf16.msra.mxu0 %v994_v12 }
  0x27   :  { %400 = vmatprep.subr.bf16.mxu0 %v964_v1 }
  0x29   :  { %326 = vmatpush1.bf16.msra.mxu1 %v971_v4 }
  0x2a   :  { %327 = vmatprep.subr.bf16.mxu1 %v981_v7 }
  0x2d   :  { %328 = vmatpush1.bf16.msra.mxu1 %v987_v10 }
  0x2e   :  { %329 = vmatprep.subr.bf16.mxu1 %v990_v11 }
  0x31   :  { %330 = vmatpush1.bf16.msra.mxu1 %v994_v12 }
  0x32   :  { %477 = vmatprep.subr.bf16.mxu1 %v964_v1 }
  0xec   :  { %v118_v21 = vpop.f32.mrb[0].mxu0 }
  0xed   :  { %v120_v23 = vpop.f32.mrb[1].mxu0  ;;  %v1033_v28 = vadd.f32 %v118_v21, %v55_v20 }
  0xee   :  { %v122_v24 = vpop.f32.mrb[2].mxu0  ;;  %v1041_v41 = vadd.f32 %v120_v23, %v59_v22 }
  0xef   :  { %v1029_v25 = vadd.f32 %v122_v24, %v55_v20  ;;  %v124_v26 = vpop.f32.mrb[3].mxu0 }
  0xf0   :  { %v1031_v27 = vadd.f32 %v124_v26, %v59_v22 }
  0xf7   :  { %v213_v29 = vpop.f32.mrb[0].mxu1 }
  0xf8   :  { %v220_v30 = vadd.f32 %v213_v29, %v1033_v28  ;;  %v215_v31 = vpop.f32.mrb[1].mxu1 }
  0xf9   :  { %v217_v32 = vpop.f32.mrb[2].mxu1  ;;  %v227_v39 = vadd.f32 %v215_v31, %v1038_v38 }
  0xfa   :  { %v812_v33 = vmul.f32 -1.442695, %v220_v30  ;;  %v218_v34 = vpop.f32.mrb[3].mxu1 }
  0xfc   :  { %848 = vpow2.f32 %v812_v33 }
 0x106   :  { %v849_v35 = vpop.eup %848 }
 0x107   :  { %v224_v36 = vadd.f32 1.0, %v849_v35 }
 0x109   :  { %850 = vrcp.f32 %v224_v36 }
 0x113   :  { %v851_v40 = vpop.eup %850 }
 0x114   :  { %v228_v42 = vmul.f32 %v851_v40, %v227_v39  ;;  %v231_v45 = vsub.f32 1.0, %v851_v40  ;;  %v237_v47 = vmul.f32 0.0, %v851_v40 }
 0x116   :  { %v229_v43 = vadd.f32 %v228_v42, %v1041_v41 }
 0x118   :  { %852 = vtanh.f32 %v229_v43 }
 0x122   :  { %v853_v44 = vpop.eup %852 }
 0x123   :  { %233 = vrot.lane.b32.xlu0 %v853_v44, %s924_s3 }
 0x195   :  { %v234_v46 = vpop.permute.xlu0 %233 }
 0x196   :  { %v236_v48 = vmul.f32 %v234_v46, %v231_v45 }
 0x198   :  { %v238_v49 = vadd.f32 %v237_v47, %v236_v48 }
 0x19a   :  { %v239_v50 = vpack.c.bf16 %v238_v49, %v238_v49  ;;  %v311_v62 = vrot.slane %v238_v49, 6 }
 0x19c   :  { %241 = vrot.lane.b32.xlu0 %v239_v50, %s924_s3 }
 0x20e   :  { %v242_v51 = vpop.permute.xlu0 %241 }
 0x20f   :  { %813 = vmatmul.mubr.msk.bf16.vlgmr.msra.gmra.mrb[4].mxu0 %vm175_vm2, %v242_v51 }
 0x210   :  { %401 = vmatpush1.bf16.msra.mxu0 %v966_v2  ;;  %432 = vmatprep.mubr.bf16.mxu0 %v923_v0 }
 0x211   :  { %402 = vmatprep.subr.bf16.mxu0 %v969_v3 }
 0x214   :  { %403 = vmatpush1.bf16.msra.mxu0 %v971_v4 }
 0x215   :  { %404 = vmatprep.subr.bf16.mxu0 %v981_v7 }
 0x218   :  { %405 = vmatpush1.bf16.msra.mxu0 %v987_v10 }
 0x219   :  { %406 = vmatprep.subr.bf16.mxu0 %v990_v11 }
 0x21c   :  { %407 = vmatpush1.bf16.msra.mxu0 %v994_v12 }
 0x21d   :  { %547 = vmatprep.subr.bf16.mxu0 %v964_v1 }
 0x2e2   :  { %v280_v52 = vpop.f32.mrb[4].mxu0 }
 0x2e3   :  { %v288_v53 = vrot.slane %v280_v52, 6  ;;  %v282_v54 = vpop.f32.mrb[5].mxu0 }
 0x2e4   :  { %v284_v55 = vpop.f32.mrb[6].mxu0  ;;  %v297_v61 = vadd.f32 %v282_v54, %v1038_v38 }
 0x2e5   :  { %v290_v56 = vadd.f32 %v288_v53, %v1033_v28  ;;  %v285_v57 = vpop.f32.mrb[7].mxu0 }
 0x2e6   :  { %v299_v63 = vrot.slane %v297_v61, 6 }
 0x2e7   :  { %v814_v58 = vmul.f32 -1.442695, %v290_v56 }
 0x2e9   :  { %854 = vpow2.f32 %v814_v58 }
 0x2f3   :  { %v855_v59 = vpop.eup %854 }
 0x2f4   :  { %v294_v60 = vadd.f32 1.0, %v855_v59 }
 0x2f6   :  { %856 = vrcp.f32 %v294_v60 }
 0x300   :  { %v857_v5 = vpop.eup %856 }
 0x301   :  { %v301_v6 = vmul.f32 %v857_v5, %v299_v63  ;;  %v313_v8 = vmul.f32 %v857_v5, %v311_v62  ;;  %v304_v15 = vsub.f32 1.0, %v857_v5 }
 0x303   :  { %v302_v9 = vadd.f32 %v301_v6, %v1041_v41 }
 0x305   :  { %858 = vtanh.f32 %v302_v9 }
 0x30f   :  { %v859_v13 = vpop.eup %858 }
 0x310   :  { %306 = vrot.lane.b32.xlu1 %v859_v13, %s924_s3 }
 0x382   :  { %v307_v17 = vpop.permute.xlu1 %306 }
 0x383   :  { %v309_v18 = vmul.f32 %v307_v17, %v304_v15 }
 0x385   :  { %v314_v19 = vadd.f32 %v313_v8, %v309_v18 }
 0x387   :  { %v315_v20 = vpack.c.bf16 %v314_v19, %v314_v19  ;;  %v388_v36 = vrot.slane %v314_v19, 6 }
 0x389   :  { %v317_v21 = vrot.slane %v315_v20, 1 }
 0x38b   :  { %318 = vrot.lane.b32.xlu1 %v317_v21, %s924_s3 }
 0x3fd   :  { %v319_v22 = vpop.permute.xlu1 %318 }
 0x3fe   :  { %815 = vmatmul.mubr.msk.bf16.vlgmr.msra.gmra.mrb[4].mxu1 %vm175_vm2, %v319_v22 }
 0x3ff   :  { %478 = vmatpush1.bf16.msra.mxu1 %v966_v2  ;;  %509 = vmatprep.mubr.bf16.mxu1 %v923_v0 }
 0x400   :  { %479 = vmatprep.subr.bf16.mxu1 %v969_v3 }
 0x403   :  { %480 = vmatpush1.bf16.msra.mxu1 %v971_v4 }
 0x404   :  { %481 = vmatprep.subr.bf16.mxu1 %v981_v7 }
 0x407   :  { %482 = vmatpush1.bf16.msra.mxu1 %v987_v10 }
 0x408   :  { %483 = vmatprep.subr.bf16.mxu1 %v990_v11 }
 0x40b   :  { %484 = vmatpush1.bf16.msra.mxu1 %v994_v12 }
 0x40c   :  { %624 = vmatprep.subr.bf16.mxu1 %v964_v1 }
 0x4d1   :  { %v357_v23 = vpop.f32.mrb[4].mxu1 }
 0x4d2   :  { %v365_v24 = vrot.slane %v357_v23, 4  ;;  %v359_v26 = vpop.f32.mrb[5].mxu1 }
 0x4d3   :  { %v361_v29 = vpop.f32.mrb[6].mxu1  ;;  %v374_v35 = vadd.f32 %v359_v26, %v1038_v38 }
 0x4d4   :  { %v367_v30 = vadd.f32 %v365_v24, %v1033_v28  ;;  %v362_v31 = vpop.f32.mrb[7].mxu1 }
 0x4d5   :  { %v376_v37 = vrot.slane %v374_v35, 4 }
 0x4d6   :  { %v816_v32 = vmul.f32 -1.442695, %v367_v30 }
 0x4d8   :  { %860 = vpow2.f32 %v816_v32 }
 0x4e2   :  { %v861_v33 = vpop.eup %860 }
 0x4e3   :  { %v371_v34 = vadd.f32 1.0, %v861_v33 }
 0x4e5   :  { %862 = vrcp.f32 %v371_v34 }
 0x4ef   :  { %v863_v39 = vpop.eup %862 }
 0x4f0   :  { %v378_v40 = vmul.f32 %v863_v39, %v376_v37  ;;  %v390_v42 = vmul.f32 %v863_v39, %v388_v36  ;;  %v381_v45 = vsub.f32 1.0, %v863_v39 }
 0x4f2   :  { %v379_v43 = vadd.f32 %v378_v40, %v1041_v41 }
 0x4f4   :  { %864 = vtanh.f32 %v379_v43 }
 0x4fe   :  { %v865_v44 = vpop.eup %864 }
 0x4ff   :  { %383 = vrot.lane.b32.xlu0 %v865_v44, %s924_s3 }
 0x571   :  { %v384_v46 = vpop.permute.xlu0 %383 }
 0x572   :  { %v386_v47 = vmul.f32 %v384_v46, %v381_v45 }
 0x574   :  { %v391_v48 = vadd.f32 %v390_v42, %v386_v47 }
 0x576   :  { %v392_v49 = vpack.c.bf16 %v391_v48, %v391_v48  ;;  %v465_v62 = vrot.slane %v391_v48, 6 }
 0x578   :  { %v394_v50 = vrot.slane %v392_v49, 2 }
 0x57a   :  { %395 = vrot.lane.b32.xlu1 %v394_v50, %s924_s3 }
 0x5ec   :  { %v396_v51 = vpop.permute.xlu1 %395 }
 0x5ed   :  { %817 = vmatmul.mubr.msk.bf16.vlgmr.msra.gmra.mrb[8].mxu0 %vm175_vm2, %v396_v51 }
 0x5ee   :  { %548 = vmatpush1.bf16.msra.mxu0 %v966_v2  ;;  %579 = vmatprep.mubr.bf16.mxu0 %v923_v0 }
 0x5ef   :  { %549 = vmatprep.subr.bf16.mxu0 %v969_v3 }
 0x5f2   :  { %550 = vmatpush1.bf16.msra.mxu0 %v971_v4 }
 0x5f3   :  { %551 = vmatprep.subr.bf16.mxu0 %v981_v7 }
 0x5f6   :  { %552 = vmatpush1.bf16.msra.mxu0 %v987_v10 }
 0x5f7   :  { %553 = vmatprep.subr.bf16.mxu0 %v990_v11 }
 0x5fa   :  { %554 = vmatpush1.bf16.msra.mxu0 %v994_v12 }
 0x5fb   :  { %701 = vmatprep.subr.bf16.mxu0 %v964_v1 }
 0x6c0   :  { %v434_v52 = vpop.f32.mrb[8].mxu0 }
 0x6c1   :  { %v442_v53 = vrot.slane %v434_v52, 2  ;;  %v436_v54 = vpop.f32.mrb[9].mxu0 }
 0x6c2   :  { %v438_v55 = vpop.f32.mrb[10].mxu0  ;;  %v451_v61 = vadd.f32 %v436_v54, %v1038_v38 }
 0x6c3   :  { %v444_v56 = vadd.f32 %v442_v53, %v1033_v28  ;;  %v439_v57 = vpop.f32.mrb[11].mxu0 }
 0x6c4   :  { %v453_v63 = vrot.slane %v451_v61, 2 }
 0x6c5   :  { %v818_v58 = vmul.f32 -1.442695, %v444_v56 }
 0x6c7   :  { %866 = vpow2.f32 %v818_v58 }
 0x6d1   :  { %v867_v59 = vpop.eup %866 }
 0x6d2   :  { %v448_v60 = vadd.f32 1.0, %v867_v59 }
 0x6d4   :  { %868 = vrcp.f32 %v448_v60 }
 0x6de   :  { %v869_v5 = vpop.eup %868 }
 0x6df   :  { %v455_v6 = vmul.f32 %v869_v5, %v453_v63  ;;  %v467_v8 = vmul.f32 %v869_v5, %v465_v62  ;;  %v458_v28 = vsub.f32 1.0, %v869_v5 }
 0x6e1   :  { %v456_v1 = vadd.f32 %v455_v6, %v1041_v41 }
 0x6e3   :  { %870 = vtanh.f32 %v456_v1 }
 0x6ed   :  { %v871_v9 = vpop.eup %870 }
 0x6ee   :  { %460 = vrot.lane.b32.xlu0 %v871_v9, %s924_s3 }
 0x760   :  { %v461_v13 = vpop.permute.xlu0 %460 }
 0x761   :  { %v463_v15 = vmul.f32 %v461_v13, %v458_v28 }
 0x763   :  { %v468_v17 = vadd.f32 %v467_v8, %v463_v15 }
 0x765   :  { %v469_v18 = vpack.c.bf16 %v468_v17, %v468_v17  ;;  %v536_v31 = vrot.slane %v468_v17, 6 }
 0x767   :  { %v471_v19 = vrot.slane %v469_v18, 3 }
 0x769   :  { %472 = vrot.lane.b32.xlu1 %v471_v19, %s924_s3 }
 0x7db   :  { %v473_v20 = vpop.permute.xlu1 %472 }
 0x7dc   :  { %819 = vmatmul.mubr.msk.bf16.vlgmr.msra.gmra.mrb[8].mxu1 %vm175_vm2, %v473_v20 }
 0x7dd   :  { %625 = vmatpush1.bf16.msra.mxu1 %v966_v2  ;;  %656 = vmatprep.mubr.bf16.mxu1 %v923_v0 }
 0x7de   :  { %626 = vmatprep.subr.bf16.mxu1 %v969_v3 }
 0x7e1   :  { %627 = vmatpush1.bf16.msra.mxu1 %v971_v4 }
 0x7e2   :  { %628 = vmatprep.subr.bf16.mxu1 %v981_v7 }
 0x7e5   :  { %629 = vmatpush1.bf16.msra.mxu1 %v987_v10 }
 0x7e6   :  { %630 = vmatprep.subr.bf16.mxu1 %v990_v11 }
 0x7e9   :  { %631 = vmatpush1.bf16.msra.mxu1 %v994_v12 }
 0x8af   :  { %v511_v41 = vpop.f32.mrb[8].mxu1 }
 0x8b0   :  { %v518_v21 = vadd.f32 %v511_v41, %v1029_v25  ;;  %v513_v22 = vpop.f32.mrb[9].mxu1 }
 0x8b1   :  { %v515_v23 = vpop.f32.mrb[10].mxu1  ;;  %v525_v32 = vadd.f32 %v513_v22, %v1038_v38 }
 0x8b2   :  { %v820_v24 = vmul.f32 -1.442695, %v518_v21  ;;  %v516_v26 = vpop.f32.mrb[11].mxu1 }
 0x8b4   :  { %872 = vpow2.f32 %v820_v24 }
 0x8be   :  { %v873_v29 = vpop.eup %872 }
 0x8bf   :  { %v522_v30 = vadd.f32 1.0, %v873_v29 }
 0x8c1   :  { %874 = vrcp.f32 %v522_v30 }
 0x8cb   :  { %v875_v33 = vpop.eup %874 }
 0x8cc   :  { %v526_v34 = vmul.f32 %v875_v33, %v525_v32  ;;  %v538_v35 = vmul.f32 %v875_v33, %v536_v31  ;;  %v529_v39 = vsub.f32 1.0, %v875_v33  ;;  %v772_v33 = vsub.s32 2, %v1018_v14 }
 0x8ce   :  { %v527_v36 = vadd.f32 %v526_v34, %v1031_v27  ;;  %v773_v34 = vrot.slane %v1024_v16, %v772_v33 }
 0x8d0   :  { %876 = vtanh.f32 %v527_v36 }
 0x8da   :  { %v877_v37 = vpop.eup %876 }
 0x8db   :  { %531 = vrot.lane.b32.xlu0 %v877_v37, %s924_s3 }
 0x94d   :  { %v532_v40 = vpop.permute.xlu0 %531 }
 0x94e   :  { %v534_v42 = vmul.f32 %v532_v40, %v529_v39 }
 0x950   :  { %v539_v43 = vadd.f32 %v538_v35, %v534_v42 }
 0x952   :  { %v540_v44 = vpack.c.bf16 %v539_v43, %v539_v43 }
 0x954   :  { %542 = vrot.lane.b32.xlu1 %v540_v44, %s924_s3 }
 0x9c6   :  { %v543_v45 = vpop.permute.xlu1 %542 }
 0x9c7   :  { %821 = vmatmul.mubr.msk.bf16.vlgmr.msra.gmra.mrb[12].mxu0 %vm175_vm2, %v543_v45 }
 0x9c8   :  { %702 = vmatpush1.bf16.msra.mxu0 %v966_v2  ;;  %733 = vmatprep.mubr.bf16.mxu0 %v923_v0 }
 0x9c9   :  { %703 = vmatprep.subr.bf16.mxu0 %v969_v3 }
 0x9cc   :  { %704 = vmatpush1.bf16.msra.mxu0 %v971_v4 }
 0x9cd   :  { %705 = vmatprep.subr.bf16.mxu0 %v981_v7  ;;  %v612_v7 = vrot.slane %v539_v43, 6 }
 0x9d0   :  { %706 = vmatpush1.bf16.msra.mxu0 %v987_v10 }
 0x9d1   :  { %707 = vmatprep.subr.bf16.mxu0 %v990_v11 }
 0x9d4   :  { %708 = vmatpush1.bf16.msra.mxu0 %v994_v12 }
 0xa9a   :  { %v581_v46 = vpop.f32.mrb[12].mxu0 }
 0xa9b   :  { %v589_v47 = vrot.slane %v581_v46, 6  ;;  %v583_v48 = vpop.f32.mrb[13].mxu0 }
 0xa9c   :  { %v585_v49 = vpop.f32.mrb[14].mxu0  ;;  %v598_v4 = vadd.f32 %v583_v48, %v1038_v38 }
 0xa9d   :  { %v591_v2 = vadd.f32 %v589_v47, %v1029_v25  ;;  %v586_v50 = vpop.f32.mrb[15].mxu0 }
 0xa9e   :  { %v600_v10 = vrot.slane %v598_v4, 6 }
 0xa9f   :  { %v822_v0 = vmul.f32 -1.442695, %v591_v2 }
 0xaa1   :  { %878 = vpow2.f32 %v822_v0 }
 0xaab   :  { %v879_v3 = vpop.eup %878 }
 0xaac   :  { %v595_v51 = vadd.f32 1.0, %v879_v3 }
 0xaae   :  { %880 = vrcp.f32 %v595_v51 }
 0xab8   :  { %v881_v52 = vpop.eup %880 }
 0xab9   :  { %v602_v11 = vmul.f32 %v881_v52, %v600_v10  ;;  %v614_v53 = vmul.f32 %v881_v52, %v612_v7  ;;  %v605_v55 = vsub.f32 1.0, %v881_v52 }
 0xabb   :  { %v603_v12 = vadd.f32 %v602_v11, %v1031_v27 }
 0xabd   :  { %882 = vtanh.f32 %v603_v12 }
 0xac7   :  { %v883_v54 = vpop.eup %882 }
 0xac8   :  { %607 = vrot.lane.b32.xlu0 %v883_v54, %s924_s3 }
 0xb3a   :  { %v608_v56 = vpop.permute.xlu0 %607 }
 0xb3b   :  { %v610_v57 = vmul.f32 %v608_v56, %v605_v55 }
 0xb3d   :  { %v615_v58 = vadd.f32 %v614_v53, %v610_v57  ;;  %v789_v53 = vsub.s32 3, %v1018_v14 }
 0xb3f   :  { %v616_v59 = vpack.c.bf16 %v615_v58, %v615_v58  ;;  %v689_v17 = vrot.slane %v615_v58, 6 }
 0xb41   :  { %v618_v60 = vrot.slane %v616_v59, 1 }
 0xb43   :  { %619 = vrot.lane.b32.xlu1 %v618_v60, %s924_s3 }
 0xbb5   :  { %v620_v61 = vpop.permute.xlu1 %619 }
 0xbb6   :  { %823 = vmatmul.mubr.msk.bf16.vlgmr.msra.gmra.mrb[12].mxu1 %vm175_vm2, %v620_v61 }
 0xc89   :  { %v658_v62 = vpop.f32.mrb[12].mxu1 }
 0xc8a   :  { %v666_v63 = vrot.slane %v658_v62, 4  ;;  %v660_v5 = vpop.f32.mrb[13].mxu1 }
 0xc8b   :  { %v662_v6 = vpop.f32.mrb[14].mxu1  ;;  %v675_v15 = vadd.f32 %v660_v5, %v1038_v38 }
 0xc8c   :  { %v668_v8 = vadd.f32 %v666_v63, %v1029_v25  ;;  %v663_v1 = vpop.f32.mrb[15].mxu1 }
 0xc8d   :  { %v677_v18 = vrot.slane %v675_v15, 4 }
 0xc8e   :  { %v824_v9 = vmul.f32 -1.442695, %v668_v8 }
 0xc90   :  { %884 = vpow2.f32 %v824_v9 }
 0xc9a   :  { %v885_v28 = vpop.eup %884 }
 0xc9b   :  { %v672_v13 = vadd.f32 1.0, %v885_v28 }
 0xc9d   :  { %886 = vrcp.f32 %v672_v13 }
 0xca7   :  { %v887_v19 = vpop.eup %886 }
 0xca8   :  { %v679_v20 = vmul.f32 %v887_v19, %v677_v18  ;;  %v691_v41 = vmul.f32 %v887_v19, %v689_v17  ;;  %v682_v23 = vsub.f32 1.0, %v887_v19 }
 0xcaa   :  { %v680_v21 = vadd.f32 %v679_v20, %v1031_v27 }
 0xcac   :  { %888 = vtanh.f32 %v680_v21 }
 0xcb6   :  { %v889_v22 = vpop.eup %888 }
 0xcb7   :  { %684 = vrot.lane.b32.xlu0 %v889_v22, %s924_s3 }
 0xd29   :  { %v685_v24 = vpop.permute.xlu0 %684 }
 0xd2a   :  { %v687_v26 = vmul.f32 %v685_v24, %v682_v23 }
 0xd2c   :  { %v692_v29 = vadd.f32 %v691_v41, %v687_v26 }
 0xd2e   :  { %v693_v30 = vpack.c.bf16 %v692_v29, %v692_v29  ;;  %v766_v47 = vrot.slane %v692_v29, 6 }
 0xd30   :  { %v695_v31 = vrot.slane %v693_v30, 2 }
 0xd32   :  { %696 = vrot.lane.b32.xlu1 %v695_v31, %s924_s3 }
 0xd36   :  { %775 = vrot.lane.b32.xlu1 %v773_v34, %s924_s3 }
 0xda4   :  { %v697_v32 = vpop.permute.xlu1 %696 }
 0xda5   :  { %825 = vmatmul.mubr.msk.bf16.vlgmr.msra.gmra.mrb[16].mxu0 %vm175_vm2, %v697_v32 }
 0xda8   :  { %v776_v7 = vpop.permute.xlu1 %775 }
 0xe78   :  { %v735_v35 = vpop.f32.mrb[16].mxu0 }
 0xe79   :  { %v743_v36 = vrot.slane %v735_v35, 2  ;;  %v737_v37 = vpop.f32.mrb[17].mxu0 }
 0xe7a   :  { %v739_v39 = vpop.f32.mrb[18].mxu0  ;;  %v752_v46 = vadd.f32 %v737_v37, %v1038_v38 }
 0xe7b   :  { %v745_v40 = vadd.f32 %v743_v36, %v1029_v25  ;;  %v740_v42 = vpop.f32.mrb[19].mxu0 }
 0xe7c   :  { %v754_v48 = vrot.slane %v752_v46, 2 }
 0xe7d   :  { %v826_v43 = vmul.f32 -1.442695, %v745_v40 }
 0xe7f   :  { %890 = vpow2.f32 %v826_v43 }
 0xe89   :  { %v891_v44 = vpop.eup %890 }
 0xe8a   :  { %v749_v45 = vadd.f32 1.0, %v891_v44 }
 0xe8c   :  { %892 = vrcp.f32 %v749_v45 }
 0xe96   :  { %v893_v49 = vpop.eup %892 }
 0xe97   :  { %v756_v2 = vmul.f32 %v893_v49, %v754_v48  ;;  %v768_v50 = vmul.f32 %v893_v49, %v766_v47  ;;  %v759_v25 = vsub.f32 1.0, %v893_v49 }
 0xe99   :  { %v757_v0 = vadd.f32 %v756_v2, %v1031_v27  ;;  %v790_v27 = vrot.slane %v1024_v16, %v789_v53 }
 0xe9b   :  { %894 = vtanh.f32 %v757_v0 }
 0xea5   :  { %v895_v3 = vpop.eup %894 }
 0xea6   :  { %761 = vrot.lane.b32.xlu0 %v895_v3, %s924_s3 }
 0xf18   :  { %v762_v51 = vpop.permute.xlu0 %761 }
 0xf19   :  { %v764_v4 = vmul.f32 %v762_v51, %v759_v25 }
 0xf1b   :  { %v769_v10 = vadd.f32 %v768_v50, %v764_v4 }
 0xf1d   :  { %v778_v52 = vmul.f32 %v776_v7, %v769_v10 }
 0xf1f   :  { %780 = vrot.lane.b32.xlu0 %v778_v52, %s924_s3 }
 0xf91   :  { %v781_v38 = vpop.permute.xlu0 %780 }
 0xf92   :  { %v784_v11 = vsel %vm783_vm3, %v781_v38, 0.0 }
 0xf93   :  { %785 = vadd.xlane.f32.xlu1 %v784_v11 }
0x1020   :  { %v786_v12 = vpop.xlane.xlu1 %785 }
0x1021   :  { %v791_v54 = vadd.f32 %v790_v27, %v786_v12 }
0x1023   :  { %793 = vst.msk [vmem:[%s1143_s4 - $0x6] sm:$0xc0] %vm792_vm4, %v791_v54 }
0x1024   :  { %798 = vsyncpa [#allocation3], 1 }

</bundles_post_ra>
